<compile_context>
chip_gen: v5e
topology: v5e:2x2
jax: 0.10.0
libtpu: 0.0.40
codegen_flags: <defaults>
</compile_context>

<pallas_src>
import functools

import jax
import jax.numpy as jnp
from jax.experimental import pallas as pl
from jax.experimental.pallas import tpu as pltpu


def _round_up(x, m):
    return (x + m - 1) // m * m


def _device_budget():
    """(scoped VMEM limit bytes, max time tile) for the local TPU generation."""
    kind = ""
    try:
        kind = jax.devices()[0].device_kind.lower()
    except Exception:
        pass
    if "v7" in kind or "7x" in kind:
        return 52 << 20, 1024      # 64 MiB physical per TC -> leave headroom
    if any(v in kind for v in ("v4", "v5", "v6")):
        return 100 << 20, 2048     # 128 MiB physical VMEM
    return 24 << 20, 1024          # unknown / older parts: stay conservative


def temporal_block_kernel(*refs, K, dilation, pad, off, tl, has_downsample):
    """One (batch, time-tile) grid step.

    refs (has_downsample=True):
      x_ref  : (1, C_in, TL)           input tile (f32 or bf16)
      w1_ref : (K, C_out_p, C_in_p)    bf16 conv1 tap weights
      b1_ref : (C_out_p, 1)            f32  conv1 bias
      w2_ref : (K, C_out_p, C_out_p)   bf16 conv2 tap weights
      b2_ref : (C_out_p, 1)            f32  conv2 bias
      wd_ref : (C_out_p, C_in_p)       bf16 1x1 downsample weights  [optional]
      bd_ref : (C_out_p, 1)            f32  downsample bias         [optional]
      o_ref  : (1, C_out, TL)          output tile (out dtype)
    scratch:
      xh_ref  : (C_in_p,  off+TL) bf16  x with carried causal halo
      h1h_ref : (C_out_p, off+TL) bf16  conv1 activation with carried halo
    """
    if has_downsample:
        (x_ref, w1_ref, b1_ref, w2_ref, b2_ref, wd_ref, bd_ref,
         o_ref, xh_ref, h1h_ref) = refs
    else:
        (x_ref, w1_ref, b1_ref, w2_ref, b2_ref,
         o_ref, xh_ref, h1h_ref) = refs
        wd_ref = bd_ref = None

    c_in = x_ref.shape[1]
    c_out = o_ref.shape[1]
    c_in_p = xh_ref.shape[0]
    c_out_p = h1h_ref.shape[0]
    t = pl.program_id(1)

    x_in = x_ref[0]                               # (c_in, tl) in input dtype
    x_bf = x_in.astype(jnp.bfloat16)

    # Per-batch-element init: causal zero halo (only [off-pad, off)) and a
    # one-off zero of the padded channel rows of the x halo buffer (staging
    # never touches those rows again, so they stay zero).
    if pad > 0 or c_in_p > c_in:
        @pl.when(t == 0)
        def _():
            if pad > 0:
                xh_ref[:, pl.ds(off - pad, pad)] = jnp.zeros(
                    (c_in_p, pad), xh_ref.dtype)
                h1h_ref[:, pl.ds(off - pad, pad)] = jnp.zeros(
                    (c_out_p, pad), h1h_ref.dtype)
            if c_in_p > c_in:
                xh_ref[pl.ds(c_in, c_in_p - c_in), :] = jnp.zeros(
                    (c_in_p - c_in, off + tl), xh_ref.dtype)

    # Stage this tile's input at the 128-lane-aligned offset `off`.
    xh_ref[pl.ds(0, c_in), pl.ds(off, tl)] = x_bf
    x_stage = xh_ref[:, pl.ds(off, tl)]           # aligned (c_in_p, tl) load,
                                                  # shared by conv1 last tap +
                                                  # downsample matmul.

    # ---- conv1 (dilated, causal): K accumulating MXU matmuls, no im2col ----
    a1 = jnp.dot(w1_ref[K - 1], x_stage, preferred_element_type=jnp.float32)
    for k in range(K - 1):
        a1 = a1 + jnp.dot(
            w1_ref[k], xh_ref[:, pl.ds(off - pad + k * dilation, tl)],
            preferred_element_type=jnp.float32)
    h1 = jnp.maximum(a1 + b1_ref[...], 0.0)
    # TODO(synk): dropout1/dropout2 are identity in eval mode; omitted.
    h1_bf = h1.astype(jnp.bfloat16)

    # ---- conv2 (dilated, causal over h1); last tap reuses h1 from vregs ----
    if pad > 0:
        h1h_ref[:, pl.ds(off, tl)] = h1_bf
    a2 = jnp.dot(w2_ref[K - 1], h1_bf, preferred_element_type=jnp.float32)
    for k in range(K - 1):
        a2 = a2 + jnp.dot(
            w2_ref[k], h1h_ref[:, pl.ds(off - pad + k * dilation, tl)],
            preferred_element_type=jnp.float32)
    h2 = jnp.maximum(a2 + b2_ref[...], 0.0)

    # ---- residual branch + final relu (f32 in vregs, one cast on store) ----
    if has_downsample:
        res = jnp.dot(wd_ref[...], x_stage,
                      preferred_element_type=jnp.float32) + bd_ref[...]
        y = jnp.maximum(h2 + res, 0.0)
        o_ref[0] = y[:c_out, :].astype(o_ref.dtype)
    else:
        res = x_in.astype(jnp.float32)            # identity residual: no reload
        y = jnp.maximum(h2[:c_out, :] + res, 0.0)
        o_ref[0] = y.astype(o_ref.dtype)

    # Carry the causal halo (last `pad` stream positions) to the next tile.
    # Wrapper guarantees tl >= pad, so src/dst windows never overlap.
    if pad > 0:
        @pl.when(t + 1 < pl.num_programs(1))
        def _():
            xh_ref[:, pl.ds(off - pad, pad)] = (
                xh_ref[:, pl.ds(off + tl - pad, pad)])
            h1h_ref[:, pl.ds(off - pad, pad)] = (
                h1h_ref[:, pl.ds(off + tl - pad, pad)])


def temporal_block(x, params, *, kernel_size, dilation, padding,
                   time_tile=None, out_dtype=jnp.bfloat16):
    """x: (N, C_in, L) float32 or bfloat16.  padding == dilation*(K-1)."""
    assert padding == dilation * (kernel_size - 1), "causal TCN config expected"
    N, C_in, L = x.shape
    w1, b1, w2, b2, wd, bd = params
    C_out = w1.shape[0]
    K = kernel_size
    has_ds = wd is not None
    if not has_ds:
        assert C_in == C_out, "identity residual requires C_in == C_out"

    CH = 16                                        # bf16 sublane-packing tile
    c_in_p = _round_up(C_in, CH)
    c_out_p = _round_up(C_out, CH)

    vmem_budget, tl_cap = _device_budget()
    x_bytes = jnp.dtype(x.dtype).itemsize
    out_bytes = jnp.dtype(out_dtype).itemsize

    # Time tile: lane-dense (multiple of 128), sized against the VMEM budget
    # (double-buffered in/out blocks + halo scratch + live f32 intermediates).
    if time_tile is None:
        per_lane = (2 * x_bytes * C_in + 2 * out_bytes * C_out
                    + 2 * (c_in_p + c_out_p) + 4 * 4 * c_out_p)
        tl = (vmem_budget // 2 // max(per_lane, 1)) // 128 * 128
        tl = max(256, min(tl_cap, tl))
    else:
        tl = _round_up(int(time_tile), 128)
    tl = min(tl, _round_up(L, 128))                # don't exceed the sequence
    tl = max(tl, _round_up(max(padding, 1), 128))  # halo carry needs tl >= pad
    assert tl % 128 == 0 and tl >= padding

    n_t = pl.cdiv(L, tl)
    off = _round_up(padding, 128)                  # lane-aligned tile start

    # ---- weights: (C_out, C_in, K) -> (K, C_out_p, C_in_p) bf16; f32 bias ---
    def prep_w(w, co_p, ci_p):
        wt = jnp.transpose(w, (2, 0, 1))           # (K, co, ci)
        return (jnp.zeros((wt.shape[0], co_p, ci_p), jnp.float32)
                .at[:, :wt.shape[1], :wt.shape[2]].set(wt)
                .astype(jnp.bfloat16))

    def prep_b(b, co_p):
        return jnp.zeros((co_p, 1), jnp.float32).at[:b.shape[0], 0].set(b)

    w1t = prep_w(w1, c_out_p, c_in_p)
    w2t = prep_w(w2, c_out_p, c_out_p)
    b1c = prep_b(b1, c_out_p)
    b2c = prep_b(b2, c_out_p)

    # Weight/bias index maps are constant across the grid, so the pipeline
    # reuses the resident VMEM copy (no per-step DMA).
    args = [x, w1t, b1c, w2t, b2c]
    in_specs = [
        pl.BlockSpec((1, C_in, tl), lambda n, t: (n, 0, t)),
        pl.BlockSpec((K, c_out_p, c_in_p), lambda n, t: (0, 0, 0)),
        pl.BlockSpec((c_out_p, 1), lambda n, t: (0, 0)),
        pl.BlockSpec((K, c_out_p, c_out_p), lambda n, t: (0, 0, 0)),
        pl.BlockSpec((c_out_p, 1), lambda n, t: (0, 0)),
    ]
    if has_ds:
        wdc = (jnp.zeros((c_out_p, c_in_p), jnp.float32)
               .at[:C_out, :C_in].set(wd.reshape(C_out, C_in))
               .astype(jnp.bfloat16))
        bdc = prep_b(bd, c_out_p)
        args += [wdc, bdc]
        in_specs += [pl.BlockSpec((c_out_p, c_in_p), lambda n, t: (0, 0)),
                     pl.BlockSpec((c_out_p, 1), lambda n, t: (0, 0))]

    scratch = [
        pltpu.VMEM((c_in_p, off + tl), jnp.bfloat16),    # x halo buffer
        pltpu.VMEM((c_out_p, off + tl), jnp.bfloat16),   # conv1-act halo buffer
    ]

    kernel = functools.partial(
        temporal_block_kernel, K=K, dilation=dilation, pad=padding,
        off=off, tl=tl, has_downsample=has_ds)

    flops = 2 * N * L * C_out * (K * C_in + K * C_out + (C_in if has_ds else 0))
    bytes_accessed = (N * C_in * L * x_bytes + N * C_out * L * out_bytes
                      + (w1t.size + w2t.size) * 2 + (b1c.size + b2c.size) * 4)
    if has_ds:
        bytes_accessed += wdc.size * 2 + bdc.size * 4

    return pl.pallas_call(
        kernel,
        out_shape=jax.ShapeDtypeStruct((N, C_out, L), out_dtype),
        grid=(N, n_t),
        in_specs=in_specs,
        out_specs=pl.BlockSpec((1, C_out, tl), lambda n, t: (n, 0, t)),
        scratch_shapes=scratch,
        compiler_params=pltpu.CompilerParams(
            dimension_semantics=("parallel", "arbitrary"),
            vmem_limit_bytes=int(vmem_budget)),
        cost_estimate=pl.CostEstimate(flops=int(flops), transcendentals=0,
                                      bytes_accessed=int(bytes_accessed)),
    )(*args)


def make_params(key, n_inputs, n_outputs, kernel_size):
    """Deterministic synthetic parameters (weight-norm folded into weights)."""
    ks = jax.random.split(key, 8)

    def weight_normed(kv, kg, shape):
        v = 0.01 * jax.random.normal(kv, shape, jnp.float32)
        g = 1.0 + 0.1 * jax.random.normal(kg, (shape[0],), jnp.float32)
        norm = jnp.sqrt(jnp.sum(v * v, axis=(1, 2), keepdims=True)) + 1e-12
        return g[:, None, None] * v / norm

    w1 = weight_normed(ks[0], ks[1], (n_outputs, n_inputs, kernel_size))
    b1 = 0.01 * jax.random.normal(ks[2], (n_outputs,), jnp.float32)
    w2 = weight_normed(ks[3], ks[4], (n_outputs, n_outputs, kernel_size))
    b2 = 0.01 * jax.random.normal(ks[5], (n_outputs,), jnp.float32)
    if n_inputs != n_outputs:
        wd = 0.01 * jax.random.normal(ks[6], (n_outputs, n_inputs, 1), jnp.float32)
        bd = 0.01 * jax.random.normal(ks[7], (n_outputs,), jnp.float32)
    else:
        wd = None          # identity residual (no downsample module)
        bd = None
    return w1, b1, w2, b2, wd, bd


def reference_forward(x, params, *, kernel_size, dilation, padding):
    """Pure-JAX f32 reference matching the PyTorch module (eval mode)."""
    w1, b1, w2, b2, wd, bd = params
    dn = jax.lax.conv_dimension_numbers(x.shape, w1.shape, ("NCH", "OIH", "NCH"))

    def conv(inp, w, b, dil, pad):
        y = jax.lax.conv_general_dilated(
            inp, w, window_strides=(1,), padding=[(pad, pad)],
            rhs_dilation=(dil,), dimension_numbers=dn)
        return y + b[None, :, None]

    L = x.shape[-1]
    o = jnp.maximum(conv(x, w1, b1, dilation, padding)[:, :, :L], 0.0)
    o = jnp.maximum(conv(o, w2, b2, dilation, padding)[:, :, :L], 0.0)
    res = x if wd is None else conv(x, wd, bd, 1, 0)
    return jnp.maximum(o + res, 0.0)


if __name__ == "__main__":
    key = jax.random.PRNGKey(0)

    # Case 1: channel-changing block (1x1 downsample), single time tile,
    # auto time-tile heuristic, default bf16 output.
    N, C_IN, C_OUT, L = 2, 4, 8, 16
    KSIZE, DIL = 3, 2
    PAD = (KSIZE - 1) * DIL
    kx, kp, key = jax.random.split(key, 3)
    x = jax.random.normal(kx, (N, C_IN, L), jnp.float32)
    params = make_params(kp, C_IN, C_OUT, KSIZE)
    out = jax.block_until_ready(
        temporal_block(x, params, kernel_size=KSIZE, dilation=DIL, padding=PAD))
    ref = reference_forward(x, params, kernel_size=KSIZE, dilation=DIL,
                            padding=PAD)
    assert out.shape == (N, C_OUT, L)
    assert jnp.allclose(out.astype(jnp.float32), ref,
                        atol=3e-2, rtol=3e-2), "case 1 mismatch"

    # Case 2: identity residual (C_in == C_out), several time tiles with a
    # ragged tail (L % tile != 0) exercising the carried causal halo and the
    # masked edge block; f32 output requested explicitly.
    N2, C2, L2 = 2, 8, 300
    K2, DIL2 = 3, 4
    PAD2 = (K2 - 1) * DIL2
    kx2, kp2, key = jax.random.split(key, 3)
    x2 = jax.random.normal(kx2, (N2, C2, L2), jnp.float32)
    params2 = make_params(kp2, C2, C2, K2)
    out2 = jax.block_until_ready(
        temporal_block(x2, params2, kernel_size=K2, dilation=DIL2, padding=PAD2,
                       time_tile=128, out_dtype=jnp.float32))
    ref2 = reference_forward(x2, params2, kernel_size=K2, dilation=DIL2,
                             padding=PAD2)
    assert out2.shape == (N2, C2, L2)
    assert jnp.allclose(out2, ref2, atol=3e-2, rtol=3e-2), "case 2 mismatch"

    print("KERNEL_OK")
</pallas_src>

<mosaic_0001>
module attributes {stable_mosaic.version = 11 : i64} {
  func.func @temporal_block_kernel(%arg0: i32, %arg1: i32, %arg2: memref<1x4x128xf32, #tpu.memory_space<vmem>>, %arg3: memref<3x16x16xbf16, #tpu.memory_space<vmem>>, %arg4: memref<16x1xf32, #tpu.memory_space<vmem>>, %arg5: memref<3x16x16xbf16, #tpu.memory_space<vmem>>, %arg6: memref<16x1xf32, #tpu.memory_space<vmem>>, %arg7: memref<16x16xbf16, #tpu.memory_space<vmem>>, %arg8: memref<16x1xf32, #tpu.memory_space<vmem>>, %arg9: memref<1x8x128xbf16, #tpu.memory_space<vmem>>, %arg10: memref<16x256xbf16, #tpu.memory_space<vmem>>, %arg11: memref<16x256xbf16, #tpu.memory_space<vmem>>) attributes {dimension_semantics = [#tpu.dimension_semantics<parallel>, #tpu.dimension_semantics<arbitrary>], iteration_bounds = array<i64: 2, 1>, scalar_prefetch = 0 : i64, scratch_operands = 2 : i64, tpu.core_type = #tpu.core_type<tc>, window_params = [{transform_indices = @transform_0, window_bounds = array<i64: 1, 4, 128>}, {pipeline_mode = #tpu.pipeline_mode<synchronous>, transform_indices = @transform_1, window_bounds = array<i64: 3, 16, 16>}, {pipeline_mode = #tpu.pipeline_mode<synchronous>, transform_indices = @transform_2, window_bounds = array<i64: 16, 1>}, {pipeline_mode = #tpu.pipeline_mode<synchronous>, transform_indices = @transform_3, window_bounds = array<i64: 3, 16, 16>}, {pipeline_mode = #tpu.pipeline_mode<synchronous>, transform_indices = @transform_4, window_bounds = array<i64: 16, 1>}, {pipeline_mode = #tpu.pipeline_mode<synchronous>, transform_indices = @transform_5, window_bounds = array<i64: 16, 16>}, {pipeline_mode = #tpu.pipeline_mode<synchronous>, transform_indices = @transform_6, window_bounds = array<i64: 16, 1>}, {transform_indices = @transform_7, window_bounds = array<i64: 1, 8, 128>}]} {
    %c0 = arith.constant 0 : index
    %c0_0 = arith.constant 0 : index
    %c0_1 = arith.constant 0 : index
    %0 = vector.load %arg2[%c0, %c0_0, %c0_1] : memref<1x4x128xf32, #tpu.memory_space<vmem>>, vector<1x4x128xf32>
    %1 = vector.shape_cast %0 : vector<1x4x128xf32> to vector<4x128xf32>
    %2 = arith.truncf %1 : vector<4x128xf32> to vector<4x128xbf16>
    %c0_i32 = arith.constant 0 : i32
    %3 = arith.cmpi eq, %arg1, %c0_i32 : i32
    %4 = arith.extui %3 : i1 to i32
    %c0_i32_2 = arith.constant 0 : i32
    %5 = arith.cmpi ne, %4, %c0_i32_2 : i32
    scf.if %5 {
      %cst_52 = arith.constant 0.000000e+00 : bf16
      %63 = vector.broadcast %cst_52 : bf16 to vector<16x4xbf16>
      %c0_53 = arith.constant 0 : index
      %c124_54 = arith.constant 124 : index
      %64 = vector.load %arg10[%c0_53, %c124_54] : memref<16x256xbf16, #tpu.memory_space<vmem>>, vector<16x4xbf16>
      tpu.vector_store %arg10[%c0_53, %c124_54], %63 {strides = array<i32>} : memref<16x256xbf16, #tpu.memory_space<vmem>>, vector<16x4xbf16>,
      %cst_55 = arith.constant 0.000000e+00 : bf16
      %65 = vector.broadcast %cst_55 : bf16 to vector<16x4xbf16>
      %c0_56 = arith.constant 0 : index
      %c124_57 = arith.constant 124 : index
      %66 = vector.load %arg11[%c0_56, %c124_57] : memref<16x256xbf16, #tpu.memory_space<vmem>>, vector<16x4xbf16>
      tpu.vector_store %arg11[%c0_56, %c124_57], %65 {strides = array<i32>} : memref<16x256xbf16, #tpu.memory_space<vmem>>, vector<16x4xbf16>,
      %cst_58 = arith.constant 0.000000e+00 : bf16
      %67 = vector.broadcast %cst_58 : bf16 to vector<12x256xbf16>
      %c4 = arith.constant 4 : index
      %c0_59 = arith.constant 0 : index
      %68 = vector.load %arg10[%c4, %c0_59] : memref<16x256xbf16, #tpu.memory_space<vmem>>, vector<12x256xbf16>
      tpu.vector_store %arg10[%c4, %c0_59], %67 {strides = array<i32>} : memref<16x256xbf16, #tpu.memory_space<vmem>>, vector<12x256xbf16>,
    } else {
    }
    %c0_3 = arith.constant 0 : index
    %c128 = arith.constant 128 : index
    %6 = vector.load %arg10[%c0_3, %c128] : memref<16x256xbf16, #tpu.memory_space<vmem>>, vector<4x128xbf16>
    tpu.vector_store %arg10[%c0_3, %c128], %2 {strides = array<i32>} : memref<16x256xbf16, #tpu.memory_space<vmem>>, vector<4x128xbf16>,
    %c0_4 = arith.constant 0 : index
    %c128_5 = arith.constant 128 : index
    %7 = vector.load %arg10[%c0_4, %c128_5] : memref<16x256xbf16, #tpu.memory_space<vmem>>, vector<16x128xbf16>
    %c2 = arith.constant 2 : index
    %c0_6 = arith.constant 0 : index
    %c0_7 = arith.constant 0 : index
    %8 = vector.load %arg3[%c2, %c0_6, %c0_7] : memref<3x16x16xbf16, #tpu.memory_space<vmem>>, vector<1x16x16xbf16>
    %9 = vector.shape_cast %8 : vector<1x16x16xbf16> to vector<16x16xbf16>
    %cst = arith.constant dense<0.000000e+00> : vector<16x128xf32>
    %10 = tpu.matmul %9, %7, %cst {dimension_numbers = #tpu.dot_dimension_numbers<[1], [0], [0], [1], [0, 0, 1, 1], [], []>} : vector<16x16xbf16>, vector<16x128xbf16>, vector<16x128xf32> -> vector<16x128xf32>
    %c0_8 = arith.constant 0 : index
    %c0_9 = arith.constant 0 : index
    %c0_10 = arith.constant 0 : index
    %11 = vector.load %arg3[%c0_8, %c0_9, %c0_10] : memref<3x16x16xbf16, #tpu.memory_space<vmem>>, vector<1x16x16xbf16>
    %12 = vector.shape_cast %11 : vector<1x16x16xbf16> to vector<16x16xbf16>
    %c0_11 = arith.constant 0 : index
    %c124 = arith.constant 124 : index
    %13 = vector.load %arg10[%c0_11, %c124] : memref<16x256xbf16, #tpu.memory_space<vmem>>, vector<16x128xbf16>
    %cst_12 = arith.constant dense<0.000000e+00> : vector<16x128xf32>
    %14 = tpu.matmul %12, %13, %cst_12 {dimension_numbers = #tpu.dot_dimension_numbers<[1], [0], [0], [1], [0, 0, 1, 1], [], []>} : vector<16x16xbf16>, vector<16x128xbf16>, vector<16x128xf32> -> vector<16x128xf32>
    %15 = arith.addf %10, %14 : vector<16x128xf32>
    %c1 = arith.constant 1 : index
    %c0_13 = arith.constant 0 : index
    %c0_14 = arith.constant 0 : index
    %16 = vector.load %arg3[%c1, %c0_13, %c0_14] : memref<3x16x16xbf16, #tpu.memory_space<vmem>>, vector<1x16x16xbf16>
    %17 = vector.shape_cast %16 : vector<1x16x16xbf16> to vector<16x16xbf16>
    %c0_15 = arith.constant 0 : index
    %c126 = arith.constant 126 : index
    %18 = vector.load %arg10[%c0_15, %c126] : memref<16x256xbf16, #tpu.memory_space<vmem>>, vector<16x128xbf16>
    %cst_16 = arith.constant dense<0.000000e+00> : vector<16x128xf32>
    %19 = tpu.matmul %17, %18, %cst_16 {dimension_numbers = #tpu.dot_dimension_numbers<[1], [0], [0], [1], [0, 0, 1, 1], [], []>} : vector<16x16xbf16>, vector<16x128xbf16>, vector<16x128xf32> -> vector<16x128xf32>
    %20 = arith.addf %15, %19 : vector<16x128xf32>
    %c0_17 = arith.constant 0 : index
    %c0_18 = arith.constant 0 : index
    %21 = vector.load %arg4[%c0_17, %c0_18] : memref<16x1xf32, #tpu.memory_space<vmem>>, vector<16x1xf32>
    %22 = vector.broadcast %21 : vector<16x1xf32> to vector<16x128xf32>
    %23 = arith.addf %20, %22 : vector<16x128xf32>
    %cst_19 = arith.constant 0.000000e+00 : f32
    %24 = vector.broadcast %cst_19 : f32 to vector<16x128xf32>
    %25 = arith.maximumf %23, %24 : vector<16x128xf32>
    %26 = arith.truncf %25 : vector<16x128xf32> to vector<16x128xbf16>
    %c0_20 = arith.constant 0 : index
    %c128_21 = arith.constant 128 : index
    %27 = vector.load %arg11[%c0_20, %c128_21] : memref<16x256xbf16, #tpu.memory_space<vmem>>, vector<16x128xbf16>
    tpu.vector_store %arg11[%c0_20, %c128_21], %26 {strides = array<i32>} : memref<16x256xbf16, #tpu.memory_space<vmem>>, vector<16x128xbf16>,
    %c2_22 = arith.constant 2 : index
    %c0_23 = arith.constant 0 : index
    %c0_24 = arith.constant 0 : index
    %28 = vector.load %arg5[%c2_22, %c0_23, %c0_24] : memref<3x16x16xbf16, #tpu.memory_space<vmem>>, vector<1x16x16xbf16>
    %29 = vector.shape_cast %28 : vector<1x16x16xbf16> to vector<16x16xbf16>
    %cst_25 = arith.constant dense<0.000000e+00> : vector<16x128xf32>
    %30 = tpu.matmul %29, %26, %cst_25 {dimension_numbers = #tpu.dot_dimension_numbers<[1], [0], [0], [1], [0, 0, 1, 1], [], []>} : vector<16x16xbf16>, vector<16x128xbf16>, vector<16x128xf32> -> vector<16x128xf32>
    %c0_26 = arith.constant 0 : index
    %c0_27 = arith.constant 0 : index
    %c0_28 = arith.constant 0 : index
    %31 = vector.load %arg5[%c0_26, %c0_27, %c0_28] : memref<3x16x16xbf16, #tpu.memory_space<vmem>>, vector<1x16x16xbf16>
    %32 = vector.shape_cast %31 : vector<1x16x16xbf16> to vector<16x16xbf16>
    %c0_29 = arith.constant 0 : index
    %c124_30 = arith.constant 124 : index
    %33 = vector.load %arg11[%c0_29, %c124_30] : memref<16x256xbf16, #tpu.memory_space<vmem>>, vector<16x128xbf16>
    %cst_31 = arith.constant dense<0.000000e+00> : vector<16x128xf32>
    %34 = tpu.matmul %32, %33, %cst_31 {dimension_numbers = #tpu.dot_dimension_numbers<[1], [0], [0], [1], [0, 0, 1, 1], [], []>} : vector<16x16xbf16>, vector<16x128xbf16>, vector<16x128xf32> -> vector<16x128xf32>
    %35 = arith.addf %30, %34 : vector<16x128xf32>
    %c1_32 = arith.constant 1 : index
    %c0_33 = arith.constant 0 : index
    %c0_34 = arith.constant 0 : index
    %36 = vector.load %arg5[%c1_32, %c0_33, %c0_34] : memref<3x16x16xbf16, #tpu.memory_space<vmem>>, vector<1x16x16xbf16>
    %37 = vector.shape_cast %36 : vector<1x16x16xbf16> to vector<16x16xbf16>
    %c0_35 = arith.constant 0 : index
    %c126_36 = arith.constant 126 : index
    %38 = vector.load %arg11[%c0_35, %c126_36] : memref<16x256xbf16, #tpu.memory_space<vmem>>, vector<16x128xbf16>
    %cst_37 = arith.constant dense<0.000000e+00> : vector<16x128xf32>
    %39 = tpu.matmul %37, %38, %cst_37 {dimension_numbers = #tpu.dot_dimension_numbers<[1], [0], [0], [1], [0, 0, 1, 1], [], []>} : vector<16x16xbf16>, vector<16x128xbf16>, vector<16x128xf32> -> vector<16x128xf32>
    %40 = arith.addf %35, %39 : vector<16x128xf32>
    %c0_38 = arith.constant 0 : index
    %c0_39 = arith.constant 0 : index
    %41 = vector.load %arg6[%c0_38, %c0_39] : memref<16x1xf32, #tpu.memory_space<vmem>>, vector<16x1xf32>
    %42 = vector.broadcast %41 : vector<16x1xf32> to vector<16x128xf32>
    %43 = arith.addf %40, %42 : vector<16x128xf32>
    %cst_40 = arith.constant 0.000000e+00 : f32
    %44 = vector.broadcast %cst_40 : f32 to vector<16x128xf32>
    %45 = arith.maximumf %43, %44 : vector<16x128xf32>
    %c0_41 = arith.constant 0 : index
    %c0_42 = arith.constant 0 : index
    %46 = vector.load %arg7[%c0_41, %c0_42] : memref<16x16xbf16, #tpu.memory_space<vmem>>, vector<16x16xbf16>
    %cst_43 = arith.constant dense<0.000000e+00> : vector<16x128xf32>
    %47 = tpu.matmul %46, %7, %cst_43 {dimension_numbers = #tpu.dot_dimension_numbers<[1], [0], [0], [1], [0, 0, 1, 1], [], []>} : vector<16x16xbf16>, vector<16x128xbf16>, vector<16x128xf32> -> vector<16x128xf32>
    %c0_44 = arith.constant 0 : index
    %c0_45 = arith.constant 0 : index
    %48 = vector.load %arg8[%c0_44, %c0_45] : memref<16x1xf32, #tpu.memory_space<vmem>>, vector<16x1xf32>
    %49 = vector.broadcast %48 : vector<16x1xf32> to vector<16x128xf32>
    %50 = arith.addf %47, %49 : vector<16x128xf32>
    %51 = arith.addf %45, %50 : vector<16x128xf32>
    %cst_46 = arith.constant 0.000000e+00 : f32
    %52 = vector.broadcast %cst_46 : f32 to vector<16x128xf32>
    %53 = arith.maximumf %51, %52 : vector<16x128xf32>
    %54 = vector.extract_strided_slice %53 {offsets = [0, 0], sizes = [8, 128], strides = [1, 1]} : vector<16x128xf32> to vector<8x128xf32>
    %55 = arith.truncf %54 : vector<8x128xf32> to vector<8x128xbf16>
    %c0_47 = arith.constant 0 : index
    %c0_48 = arith.constant 0 : index
    %c0_49 = arith.constant 0 : index
    %56 = vector.load %arg9[%c0_47, %c0_48, %c0_49] : memref<1x8x128xbf16, #tpu.memory_space<vmem>>, vector<1x8x128xbf16>
    %57 = vector.shape_cast %56 : vector<1x8x128xbf16> to vector<8x128xbf16>
    %58 = vector.shape_cast %55 : vector<8x128xbf16> to vector<1x8x128xbf16>
    tpu.vector_store %arg9[%c0_47, %c0_48, %c0_49], %58 {strides = array<i32>} : memref<1x8x128xbf16, #tpu.memory_space<vmem>>, vector<1x8x128xbf16>,
    %c1_i32 = arith.constant 1 : i32
    %59 = arith.addi %arg1, %c1_i32 : i32
    %c1_i32_50 = arith.constant 1 : i32
    %60 = arith.cmpi slt, %59, %c1_i32_50 : i32
    %61 = arith.extui %60 : i1 to i32
    %c0_i32_51 = arith.constant 0 : i32
    %62 = arith.cmpi ne, %61, %c0_i32_51 : i32
    scf.if %62 {
      %c0_52 = arith.constant 0 : index
      %c252 = arith.constant 252 : index
      %63 = vector.load %arg10[%c0_52, %c252] : memref<16x256xbf16, #tpu.memory_space<vmem>>, vector<16x4xbf16>
      %c0_53 = arith.constant 0 : index
      %c124_54 = arith.constant 124 : index
      %64 = vector.load %arg10[%c0_53, %c124_54] : memref<16x256xbf16, #tpu.memory_space<vmem>>, vector<16x4xbf16>
      tpu.vector_store %arg10[%c0_53, %c124_54], %63 {strides = array<i32>} : memref<16x256xbf16, #tpu.memory_space<vmem>>, vector<16x4xbf16>,
      %c0_55 = arith.constant 0 : index
      %c252_56 = arith.constant 252 : index
      %65 = vector.load %arg11[%c0_55, %c252_56] : memref<16x256xbf16, #tpu.memory_space<vmem>>, vector<16x4xbf16>
      %c0_57 = arith.constant 0 : index
      %c124_58 = arith.constant 124 : index
      %66 = vector.load %arg11[%c0_57, %c124_58] : memref<16x256xbf16, #tpu.memory_space<vmem>>, vector<16x4xbf16>
      tpu.vector_store %arg11[%c0_57, %c124_58], %65 {strides = array<i32>} : memref<16x256xbf16, #tpu.memory_space<vmem>>, vector<16x4xbf16>,
    } else {
    }
    return
  }
  func.func @transform_0(%arg0: i32, %arg1: i32) -> (i32, i32, i32) {
    %c0_i32 = arith.constant 0 : i32
    %c0_i32_0 = arith.constant 0 : i32
    return %arg0, %c0_i32, %arg1 : i32, i32, i32
  }
  func.func @transform_1(%arg0: i32, %arg1: i32) -> (i32, i32, i32) {
    %c0_i32 = arith.constant 0 : i32
    %c0_i32_0 = arith.constant 0 : i32
    %c0_i32_1 = arith.constant 0 : i32
    %c0_i32_2 = arith.constant 0 : i32
    return %c0_i32, %c0_i32_0, %c0_i32_1 : i32, i32, i32
  }
  func.func @transform_2(%arg0: i32, %arg1: i32) -> (i32, i32) {
    %c0_i32 = arith.constant 0 : i32
    %c0_i32_0 = arith.constant 0 : i32
    %c0_i32_1 = arith.constant 0 : i32
    return %c0_i32, %c0_i32_0 : i32, i32
  }
  func.func @transform_3(%arg0: i32, %arg1: i32) -> (i32, i32, i32) {
    %c0_i32 = arith.constant 0 : i32
    %c0_i32_0 = arith.constant 0 : i32
    %c0_i32_1 = arith.constant 0 : i32
    %c0_i32_2 = arith.constant 0 : i32
    return %c0_i32, %c0_i32_0, %c0_i32_1 : i32, i32, i32
  }
  func.func @transform_4(%arg0: i32, %arg1: i32) -> (i32, i32) {
    %c0_i32 = arith.constant 0 : i32
    %c0_i32_0 = arith.constant 0 : i32
    %c0_i32_1 = arith.constant 0 : i32
    return %c0_i32, %c0_i32_0 : i32, i32
  }
  func.func @transform_5(%arg0: i32, %arg1: i32) -> (i32, i32) {
    %c0_i32 = arith.constant 0 : i32
    %c0_i32_0 = arith.constant 0 : i32
    %c0_i32_1 = arith.constant 0 : i32
    return %c0_i32, %c0_i32_0 : i32, i32
  }
  func.func @transform_6(%arg0: i32, %arg1: i32) -> (i32, i32) {
    %c0_i32 = arith.constant 0 : i32
    %c0_i32_0 = arith.constant 0 : i32
    %c0_i32_1 = arith.constant 0 : i32
    return %c0_i32, %c0_i32_0 : i32, i32
  }
  func.func @transform_7(%arg0: i32, %arg1: i32) -> (i32, i32, i32) {
    %c0_i32 = arith.constant 0 : i32
    %c0_i32_0 = arith.constant 0 : i32
    return %arg0, %c0_i32, %arg1 : i32, i32, i32
  }
}

</mosaic_0001>

<bundles_post_ra>
// kernel: tpu_custom_call.1
= control target key start
LH: loop header
LB: loop body
LE: loop exit
PB: predicated region body
PF: predicated region fallthrough
CT: control target
= control target key end

     0   :  { %s1302_s0 = inlined_call_operand.hbm [shape: f32[2,4,16], index: 0, kind: input, shape index: {}]   ;;  %s1303_s1 = inlined_call_operand.vmem [shape: bf16[3,16,16], index: 1, kind: input, shape index: {}]   ;;  %s1304_s2 = inlined_call_operand.vmem [shape: f32[16,1], index: 2, kind: input, shape index: {}]   ;;  %s1305_s3 = inlined_call_operand.vmem [shape: bf16[3,16,16], index: 3, kind: input, shape index: {}]   ;;  %s1306_s4 = inlined_call_operand.vmem [shape: f32[16,1], index: 4, kind: input, shape index: {}]   ;;  %s1307_s5 = inlined_call_operand.hbm [shape: bf16[16,16], index: 5, kind: input, shape index: {}]   ;;  %s1308_s6 = inlined_call_operand.vmem [shape: f32[16,1], index: 6, kind: input, shape index: {}]   ;;  %s1309_s7 = inlined_call_operand.hbm [shape: bf16[2,8,16], index: 7, kind: output, shape index: {}]  }
   0x1   :  { %1311 = sst [smem:[#allocation14_spill]] %s1307_s5 }
   0x2   :  { %12 = vsyncpa [#allocation5], 0 }
   0x3   :  { %14 = vsyncpa [#allocation5 + $0x1], 0 }
   0x4   :  { %15 = vsyncpa [#allocation8], 0 }
   0x5   :  { %16 = vsyncpa [#allocation6], 0 }
   0x6   :  { %18 = vsyncpa [#allocation6 + $0x1], 0  ;;  %s1106_s24 = smov 0   ;;  %s1108_s25 = smov 0  }
   0x7   :  { %s1110_s26 = smov 0   ;;  %s1112_s27 = smov 0  }
   0x8   :  { %s1114_s28 = smov 0   ;;  %s1116_s29 = smov 0  }
   0x9 LB: > { %s741_s30 = sadd.s32 4294967295, %s1058_s29   ;;  %p743_p0 = scmp.ge.s32.totalorder %s1058_s29, 1  ;;  %s1058_s29 = sphi %s1116_s29, %s24_s29   ;;  %s1054_s28 = sphi %s1114_s28, %s1325_s28   ;;  %s1050_s27 = sphi %s1112_s27, %s1324_s27   ;;  %s1046_s26 = sphi %s1110_s26, %s1323_s26   ;;  %s1042_s25 = sphi %s1108_s25, %s1322_s25   ;;  %s1038_s24 = sphi %s1106_s24, %s1321_s24  }
   0xa   : > { %p1138_p1 = scmp.eq.s32.totalorder %s741_s30, 0  ;;  %p223_p2 = scmp.lt.s32.totalorder %s1058_s29, 3 }
   0xb   : > { %s1313_s5 = sld [smem:[#allocation14_spill]]  ;;  %s1060_s13 = smov [#allocation7]  }
   0xc   : > { %p1146_p3 = pnand %p743_p0, %p223_p2  ;;  %s248_s14 = sshll.u32 %s1060_s13, 4  ;;  %s249_s14 = int_to_ptr.vmem [resolvable:$true] %s248_s14 }
   0xd   : > { %p745_p6 = scmp.ge.s32.totalorder %s1058_s29, 2  ;;  %s1061_s15 = smov 64  }
   0xe   : > { %p839_p4 = pneg %p1146_p3  ;;  %s1062_s16 = smov 4  }
   0xf   : > { %s742_s17 = sadd.s32 4294967294, %s1058_s29   ;;  %s36_s18 = sadd.s32 1, %s1054_s28 }
  0x10   : > { %p840_p5 = pnand %p839_p4, %p1138_p1  ;;  %s45_s19 = sadd.s32 1, %s1046_s26 }
  0x11   : > { %s246_s11 = sshll.u32 %s1313_s5, 4  ;;  %p38_p7 = scmp.ge.s32.totalorder %s36_s18, 2  ;;  %s247_s11 = int_to_ptr.hbm [resolvable:$true] %s246_s11 }
  0x12   : > { %842 = dma.hbm_to_vmem [thread:$0]  (!%p840_p5), %s247_s11, 128, %s249_s14, [#allocation8], %s1061_s15, %s1061_s15, %s1062_s16  }
  0x13   : > { %p52_p8 = scmp.ne.s32.totalorder %s1046_s26, %s1042_s25  ;;  %p53_p9 = scmp.eq.s32.totalorder %s1058_s29, 0 }
  0x14   : > { %p58_p10 = scmp.ne.s32.totalorder %s1042_s25, %s1038_s24  ;;  %s1327_s18 = smov (%p38_p7, %s36_s18), 0 }
  0x15   : > { %1315 = sst [smem:[#allocation13_spill]] %s1327_s18  ;;  %p1165_p11 = por %p53_p9, %p52_p8 }
  0x16   : > { %p1171_p12 = por %p1138_p1, %p58_p10  ;;  %s40_s22 = ssub.s32 %s1054_s28, %s1327_s18 }
  0x17   : > { %p210_p13 = scmp.eq.s32.totalorder %s741_s30, 1  ;;  %p43_p0 = scmp.eq.s32.totalorder %s40_s22, 0 }
  0x18   : > { %p216_p2 = scmp.eq.s32.totalorder %s742_s17, 1  ;;  %p852_p5 = scmp.lt.s32.totalorder %s1058_s29, 2 }
  0x19   : > { %p1177_p4 = por %p210_p13, %p52_p8  ;;  %s265_s11 = sand.u32 1, %s1046_s26  }
  0x1a   : > { %s1183_s9 = scalar_select %p43_p0, %s1046_s26, %s45_s19  }
  0x1b   : > { %p1185_p7 = por %p216_p2, %p58_p10  ;;  %s746_s13 = sshll.u32 %s265_s11, 2 }
  0x1c   : > { %s747_s14 = sshll.u32 %s1054_s28, 2  ;;  %s269_s22 = scalar_lea.vmem [#allocation4], %s746_s13 }
  0x1d   : > { %s274_s30 = scalar_lea.hbm %s1302_s0, %s747_s14  ;;  %s278_s17 = sshll.u32 %s269_s22, 4  ;;  %s279_s17 = int_to_ptr.vmem [resolvable:$true] %s278_s17 }
  0x1e   : > { %s276_s5 = sshll.u32 %s274_s30, 4  ;;  %p844_p8 = pnand %p852_p5, %p1165_p11  ;;  %s277_s5 = int_to_ptr.hbm [resolvable:$true] %s276_s5 }
  0x1f   : > { %s266_s19 = scalar_lea.sflag [#allocation5], %s265_s11  ;;  %287 = sbr.rel (%p1146_p3) target bundleno = 606 (0x25e), region = 48 }
  0x20   : > { %846 = dma.hbm_to_vmem [thread:$0]  (!%p844_p8), %s277_s5, 64, %s279_s17, %s266_s19  }
  0x21   : > { %s1199_s18 = sand.u32 (!%p1146_p3), 1, %s1042_s25  }
  0x22   : > { %s749_s14 = sshll.u32 (!%p1146_p3), %s1199_s18, 2  ;;  %s290_s13 = scalar_lea.sflag (!%p1146_p3), [#allocation5], %s1199_s18 }
  0x23   : > { %s293_s15 = scalar_lea.vmem (!%p1146_p3), [#allocation4], %s749_s14 }
  0x24   : > { %1025 = dma.done.wait (%p1171_p12), %s290_s13, 64  }
  0x25   : > { %1027 = vsyncadd (%p1171_p12), %s290_s13, 4294967232 }
  0x26   : > { %1029 = dma.done.wait (%p1138_p1), [#allocation8], 128  }
  0x27   : > { %1031 = vsyncadd (%p1138_p1), [#allocation8], 4294967168  ;;  %vm337_vm0 = vcmask 1044448   ;;  %v1063_v0 = vmov 0   ;;  %v331_v1 = vld [vmem:[%s293_s15] sm:$0xf] }
  0x28   : > { %338 = vst.msk [vmem:[#allocation2] sm:$0xf] %vm337_vm0, %v1063_v0  ;;  %909 = vset.pattern.permute.xlu2 %v1063_v0  ;;  %910 = vset.pattern.permute.xlu1 %v1063_v0  ;;  %v332_v2 = vpack.c.bf16 %v331_v1, %v331_v1  ;;  %s1064_s5 = smov 4   ;;  %s1065_s8 = smov 2   ;;  %v820_v12 = vld [vmem:[%s1303_s1 + $0x10] sm:$0xff]  ;;  %vm374_vm1 = vcmask 130048  }
  0x29   : > { %339 = vst.msk [vmem:[#allocation2 + $0x8] sm:$0xf] %vm337_vm0, %v1063_v0  ;;  %911 = vset.pattern.permute.xlu0 %v1063_v0  ;;  %v454_v13 = vld [vmem:[%s1304_s2] sm:$0xff]  ;;  %v455_v19 = vld [vmem:[%s1304_s2 + $0x8] sm:$0xff]  ;;  %vm371_vm2 = vcmask 31744   ;;  %vm432_vm3 = vcmask 15360  }
  0x2a   : > { %342 = vst [vmem:[#allocation2] sm:$0xcc] %v1063_v0  ;;  %458 = vperm.xlu2 %909, %v454_v13   ;;  %v821_v24 = vld [vmem:[%s1303_s1] sm:$0xff]  ;;  %v824_v25 = vld [vmem:[%s1303_s1 + $0x8] sm:$0xff]  ;;  %v825_v54 = vld [vmem:[%s1305_s3 + $0x10] sm:$0xff]  ;;  %s816_s17 = sshll.u32 %s1050_s27, 2 }
  0x2b   : > { %343 = vst [vmem:[#allocation2 + $0x8] sm:$0xff] %v1063_v0  ;;  %v584_v26 = vld [vmem:[%s1308_s6] sm:$0xff]  ;;  %v830_v27 = vld [vmem:[#allocation7] sm:$0xff]  ;;  %s646_s15 = scalar_lea.hbm %s1309_s7, %s816_s17  ;;  %s329_s12 = scalar_lea.vmem [#allocation9], %s749_s14 }
  0x2c   : > { %340 = vst.msk [vmem:[#allocation3] sm:$0xf] %vm337_vm0, %v1063_v0  ;;  %v574_v55 = vld [vmem:[%s1306_s4] sm:$0xff]  ;;  %v829_v63 = vld [vmem:[%s1305_s3 + $0x8] sm:$0xff]  ;;  %s648_s20 = sshll.u32 %s329_s12, 4  ;;  %s650_s21 = sshll.u32 %s646_s15, 4  ;;  %s649_s20 = int_to_ptr.vmem [resolvable:$true] %s648_s20  ;;  %s651_s21 = int_to_ptr.hbm [resolvable:$true] %s650_s21 }
  0x2d   : > { %341 = vst.msk [vmem:[#allocation3 + $0x8] sm:$0xf] %vm337_vm0, %v1063_v0  ;;  %v826_v62 = vld [vmem:[%s1305_s3] sm:$0xff]  ;;  %s635_s27 = scalar_lea.sflag [#allocation6], %s1199_s18  ;;  %s986_s11 = sshra.s32 %s651_s21, 4  ;;  %s987_s11 = int_to_ptr.hbm [resolvable:$true] %s986_s11 }
  0x2e   : > { %344 = vst [vmem:[#allocation2 + $0x4] sm:$0x3] %v332_v2  ;;  %s988_s16 = scalar_lea.hbm %s987_s11, 4  ;;  %s992_s30 = scalar_lea.hbm %s1309_s7, 8 }
  0x2f   : > { %p989_p1 = scmp.ne.s32.totalorder %s987_s11, %s988_s16  ;;  %p993_p10 = scmp.lt.s32.totalorder %s987_s11, %s1309_s7 }
  0x30   : > { %p994_p11 = scmp.lt.s32.totalorder %s992_s30, %s988_s16 }
  0x31   : > { %v760_v3 = vld [vmem:[#allocation2] sm:$0xf]  ;;  %p990_p3 = pnand %p989_p1, %p1177_p4 }
  0x32   : > { %v823_v4 = vld [vmem:[#allocation2 + $0x4] sm:$0xf0]  ;;  %v762_v6 = vld [vmem:[#allocation2 + $0x8] sm:$0xf0]  ;;  %463 = vperm.xlu2 %909, %v455_v19   ;;  %p995_p12 = por %p994_p11, %p993_p10 }
  0x33   : > { %v761_v5 = vor.u32 %v823_v4, %v760_v3  ;;  %v819_v10 = vld [vmem:[#allocation2 + $0x8] sm:$0xf0]  ;;  %v791_v14 = vld [vmem:[#allocation3] sm:$0xf]  ;;  %p991_p9 = pneg %p990_p3 }
  0x34   : > { %v828_v15 = vld [vmem:[#allocation3 + $0x4] sm:$0xf0] }
  0x35   : > { %367 = vrot.lane.b32.xlu1 %v761_v5, %s1064_s5  ;;  %428 = vrot.lane.b32.xlu0 %v761_v5, %s1065_s8  ;;  %v822_v7 = vld [vmem:[#allocation2 + $0x4] sm:$0xf]  ;;  %v792_v16 = vor.u32 %v828_v15, %v791_v14  ;;  %p996_p13 = pnand %p995_p12, %p991_p9 }
  0x36   : > { %v765_v8 = vor.u32 %v822_v7, %v762_v6  ;;  %v773_v9 = vld [vmem:[#allocation2 + $0x4] sm:$0xf] }
  0x37   : > { %v774_v11 = vor.u32 %v819_v10, %v773_v9 }
  0x39   : > { %413 = vmatpush.bf16.msra.mxu1 %v774_v11 }
  0x3a   : > { %551 = vrot.lane.b32.xlu2 %v792_v16, %s1065_s8 }
  0x3c   : > { %775 = vmatmul.msk.bf16.vlgmr.msra.gmra.mxu1 %vm374_vm1, %v820_v12 }
  0x3d   : > { %369 = vrot.lane.b32.xlu1 %v765_v8, %s1064_s5  ;;  %430 = vrot.lane.b32.xlu0 %v765_v8, %s1065_s8 }
  0x42   : > { %588 = vperm.xlu2 %909, %v584_v26  }
  0x45   : > { %494 = vrot.lane.b32.xlu0 %v792_v16, %s1064_s5 }
  0x84   : > { %v459_v31 = vpop.permute.xlu2 %458 }
  0x8c   : > { %v464_v42 = vpop.permute.xlu2 %463 }
  0x94   : > { %v552_v57 = vpop.permute.xlu2 %551 }
  0x9c   : > { %v589_v9 = vpop.permute.xlu2 %588 }
  0xa7   : > { %v368_v17 = vpop.permute.xlu1 %367  ;;  %v429_v18 = vpop.permute.xlu0 %428 }
  0xaf   : > { %v370_v20 = vpop.permute.xlu1 %369  ;;  %v431_v21 = vpop.permute.xlu0 %430 }
  0xb0   : > { %v372_v22 = vsel %vm371_vm2, %v368_v17, %v370_v20  ;;  %v433_v23 = vsel %vm432_vm3, %v429_v18, %v431_v21 }
  0xb1   : > { %385 = vmatpush.bf16.msra.mxu0 %v372_v22  ;;  %445 = vmatpush.bf16.msra.mxu2 %v433_v23 }
  0xb4   : > { %766 = vmatmul.msk.bf16.vlgmr.msra.gmra.mxu0 %vm374_vm1, %v821_v24  ;;  %782 = vmatmul.msk.bf16.vlgmr.msra.gmra.mxu2 %vm374_vm1, %v824_v25 }
  0xb5   : > { %610 = vmatpush.bf16.msrb.mxu2 %v774_v11 }
  0xb7   : > { %v495_v56 = vpop.permute.xlu0 %494 }
  0xb9   : > { %v415_v29 = vpop.f32.mrf.mxu1 }
  0xc1   : > { %v417_v37 = vpop.f32.mrf.mxu1 }
  0xc4   : > { %814 = vmatmul.msk.bf16.vlgmr.msrb.gmra.mxu2 %vm374_vm1, %v830_v27 }
 0x131   : > { %v387_v28 = vpop.f32.mrf.mxu0 }
 0x132   : > { %v416_v30 = vadd.f32 %v415_v29, %v387_v28 }
 0x137   : > { %v447_v32 = vpop.f32.mrf.mxu2 }
 0x138   : > { %v452_v33 = vadd.f32 %v447_v32, %v416_v30 }
 0x139   : > { %v389_v35 = vpop.f32.mrf.mxu0 }
 0x13a   : > { %v466_v34 = vadd.f32 %v459_v31, %v452_v33  ;;  %v418_v39 = vadd.f32 %v417_v37, %v389_v35 }
 0x13c   : > { %v468_v36 = vmax.f32 %v466_v34, 0.0 }
 0x13e   : > { %v470_v38 = vpack.c.bf16 %v468_v36, %v468_v36 }
 0x13f   : > { %v449_v40 = vpop.f32.mrf.mxu2 }
 0x140   : > { %472 = vst [vmem:[#allocation3 + $0x4] sm:$0xf] %v470_v38  ;;  %v453_v41 = vadd.f32 %v449_v40, %v418_v39  ;;  %v523_v47 = vunpack.c.l.b16 %v470_v38 }
 0x142   : > { %v467_v43 = vadd.f32 %v464_v42, %v453_v41 }
 0x144   : > { %v469_v44 = vmax.f32 %v467_v43, 0.0 }
 0x146   : > { %v471_v45 = vpack.c.bf16 %v469_v44, %v469_v44 }
 0x147   : > { %v612_v46 = vpop.f32.mrf.mxu2  ;;  %v827_v50 = vld [vmem:[#allocation3 + $0x4] sm:$0xf] }
 0x148   : > { %473 = vst [vmem:[#allocation3 + $0xc] sm:$0xf] %v471_v45  ;;  %v524_v48 = vunpack.c.l.b16 %v471_v45  ;;  %v613_v10 = vadd.f32 %v612_v46, %v589_v9 }
 0x14a   : > { %v525_v49 = vpack.c.b16 %v524_v48, %v523_v47 }
 0x14c   : > { %537 = vmatpush.bf16.msrb.mxu0 %v525_v49 }
 0x14f   : > { %v793_v51 = vld [vmem:[#allocation3 + $0x8] sm:$0xf0]  ;;  %v614_v52 = vpop.f32.mrf.mxu2  ;;  %802 = vmatmul.msk.bf16.vlgmr.msrb.gmra.mxu0 %vm374_vm1, %v825_v54 }
 0x150   : > { %v796_v53 = vor.u32 %v827_v50, %v793_v51 }
 0x152   : > { %553 = vrot.lane.b32.xlu0 %v796_v53, %s1065_s8  ;;  %496 = vrot.lane.b32.xlu1 %v796_v53, %s1064_s5 }
 0x15a   : > { %577 = vperm.xlu1 %910, %v574_v55  }
 0x1c4   : > { %v554_v58 = vpop.permute.xlu0 %553  ;;  %v497_v59 = vpop.permute.xlu1 %496 }
 0x1c5   : > { %v498_v60 = vsel %vm371_vm2, %v495_v56, %v497_v59  ;;  %v555_v61 = vsel %vm432_vm3, %v552_v57, %v554_v58 }
 0x1c6   : > { %510 = vmatpush.bf16.msra.mxu3 %v498_v60  ;;  %567 = vmatpush.bf16.msrb.mxu1 %v555_v61 }
 0x1c9   : > { %797 = vmatmul.msk.bf16.vlgmr.msra.gmra.mxu3 %vm374_vm1, %v826_v62  ;;  %809 = vmatmul.msk.bf16.vlgmr.msrb.gmra.mxu1 %vm374_vm1, %v829_v63 }
 0x1cc   : > { %v539_v0 = vpop.f32.mrf.mxu0  ;;  %v578_v5 = vpop.permute.xlu1 %577 }
 0x1d4   : > { %v541_v1 = vpop.f32.mrf.mxu0 }
 0x246   : > { %v569_v2 = vpop.f32.mrf.mxu1 }
 0x24c   : > { %v512_v3 = vpop.f32.mrf.mxu3 }
 0x24d   : > { %v540_v4 = vadd.f32 %v539_v0, %v512_v3 }
 0x24e   : > { %v571_v6 = vpop.f32.mrf.mxu1 }
 0x24f   : > { %v573_v7 = vadd.f32 %v569_v2, %v540_v4 }
 0x251   : > { %v580_v8 = vadd.f32 %v578_v5, %v573_v7 }
 0x253   : > { %v581_v11 = vmax.f32 %v580_v8, 0.0 }
 0x254   : > { %v514_v12 = vpop.f32.mrf.mxu3 }
 0x255   : > { %v616_v13 = vadd.f32 %v613_v10, %v581_v11 }
 0x257   : > { %v617_v14 = vmax.f32 %v616_v13, 0.0 }
 0x259   : > { %v618_v15 = vpack.c.bf16 %v617_v14, %v617_v14 }
 0x25b   : > { %619 = vst [vmem:[%s329_s12] sm:$0xf] %v618_v15 }
 0x25c   : > { %999 = shalt.err (!%p996_p13)
}
 0x25d   : > { %837 = dma.vmem_to_hbm [thread:$0]  (%p1177_p4), %s649_s20, 64, %s651_s21, %s635_s27  }
 0x25e PF: > { %s662_s18 = sand.u32 1, %s1038_s24   ;;  %p848_p0 = pnand %p745_p6, %p1185_p7 }
 0x25f   : > { %s663_s17 = scalar_lea.sflag [#allocation6], %s662_s18 }
 0x260   : > { %p849_p2 = pneg %p848_p0 }
 0x262   : > { %1033 = dma.done.wait (%p849_p2), %s663_s17, 64  }
 0x263   : > { %1035 = vsyncadd (%p849_p2), %s663_s17, 4294967232  ;;  %s24_s29 = sadd.s32 1, %s1058_s29   ;;  %s1320_s23 = sld [smem:[#allocation13_spill]] }
 0x264   : > { %p21_p5 = scmp.ge.s32.totalorder %s24_s29, 4   ;;  %s1321_s24 = smov %s1042_s25 }
 0x265   : > { %s1322_s25 = smov %s1046_s26  ;;  %s1323_s26 = smov %s1183_s9 }
 0x266   : > { %s1324_s27 = smov %s1054_s28  ;;  %23 = sbr.rel (!%p21_p5) target bundleno = 9 (0x9), region = 109 }
 0x269   : > { %s1325_s28 = smov %s1320_s23 }
 0x26b   :  { %669 = vsyncpa [#allocation5], 1 }
 0x26c   :  { %671 = vsyncpa [#allocation5 + $0x1], 1 }
 0x26d   :  { %672 = vsyncpa [#allocation8], 1 }
 0x26e   :  { %673 = vsyncpa [#allocation6], 1 }
 0x26f   :  { %675 = vsyncpa [#allocation6 + $0x1], 1 }

</bundles_post_ra>
